<compile_context>
chip_gen: v5e
topology: v5e:2x2
jax: 0.10.0
libtpu: 0.0.40
codegen_flags: <defaults>
</compile_context>

<pallas_src>
import jax
import jax.numpy as jnp
from jax.experimental import pallas as pl
from jax.experimental.pallas import tpu as pltpu


def _round_up(x: int, m: int) -> int:
    return (x + m - 1) // m * m


def _pick_tile(dim_padded: int, base: int, max_tile: int) -> int:
    """Largest multiple of `base` that divides `dim_padded` and is <= max_tile."""
    best = base
    t = base
    limit = min(dim_padded, max_tile)
    while t <= limit:
        if dim_padded % t == 0:
            best = t
        t += base
    return best


def _linear_sigmoid_kernel(x_ref, w_ref, b_ref, o_ref, acc_ref):
    """One (tm, tn) output tile; K is the last (reduction) grid axis."""
    k = pl.program_id(2)

    @pl.when(k == 0)
    def _init():
        # Start the f32 accumulator from the broadcast bias (saves an epilogue add).
        acc_ref[...] = jnp.broadcast_to(b_ref[...], acc_ref.shape)

    # Hot path: bf16 x bf16 -> f32 accumulate on the MXU.
    acc_ref[...] += jnp.dot(
        x_ref[...], w_ref[...], preferred_element_type=jnp.float32
    )

    @pl.when(k == pl.num_programs(2) - 1)
    def _finalize():
        # Sigmoid in the epilogue only (EUP), then cast + store lane-dense.
        o_ref[...] = jax.nn.sigmoid(acc_ref[...]).astype(o_ref.dtype)


def prepare_params(w_torch, b, param_dtype=jnp.bfloat16):
    """One-time parameter prep (hoisted out of the per-call path).

    w_torch: (D_out, D_in) PyTorch nn.Linear weight layout.
    b:       (D_out,) bias.
    Returns (w_p, b_p, d_in, d_out):
      w_p: (Kp, Np) param_dtype, padded W.T (Kp/Np are 128-multiples)
      b_p: (1, Np)  float32, padded bias
    """
    d_out, d_in = w_torch.shape
    kp = _round_up(d_in, 128)
    np_ = _round_up(d_out, 128)
    w_p = jnp.zeros((kp, np_), param_dtype).at[:d_in, :d_out].set(
        w_torch.T.astype(param_dtype))
    b_p = jnp.zeros((1, np_), jnp.float32).at[0, :d_out].set(
        b.astype(jnp.float32))
    return w_p, b_p, d_in, d_out


def linear_sigmoid(x, w_p, b_p, d_in, d_out, *,
                   max_tm=1024, max_tn=512, max_tk=1024, out_dtype=None):
    """sigmoid(x @ W^T + b) using pre-padded params from prepare_params().

    x:   (B, d_in) activation (any float dtype; cast to bf16 for the MXU)
    w_p: (Kp, Np)  padded, pre-transposed bf16 weight
    b_p: (1, Np)   padded f32 bias
    Returns (B, d_out) in out_dtype (defaults to x.dtype).
    """
    B, xk = x.shape
    assert xk == d_in, (xk, d_in)
    Kp, Np = w_p.shape
    out_dtype = out_dtype if out_dtype is not None else x.dtype

    # --- Tile selection: tiles always divide the padded dims (no waste). ---
    if B <= max_tm:
        Mp = _round_up(max(B, 16), 16)   # whole batch in one M block:
        tm = Mp                          # weight streamed from HBM exactly once
    else:
        Mp = _round_up(B, 256)
        tm = _pick_tile(Mp, 128, max_tm)
    tn = _pick_tile(Np, 128, max_tn)
    tk = _pick_tile(Kp, 128, max_tk)

    # v7x megacore: with a single M block, keep >=2 N blocks so the two
    # TensorCores both get a "parallel" slice (v5e/v6e unaffected).
    if Mp // tm == 1 and Np // tn == 1 and Np >= 256:
        tn = _pick_tile(Np, 128, Np // 2)

    # --- Activation prep: pad/cast only when actually needed. ---
    if B == Mp and d_in == Kp and x.dtype == jnp.bfloat16:
        x_p = x
    else:
        x_p = jnp.zeros((Mp, Kp), jnp.bfloat16).at[:B, :d_in].set(
            x.astype(jnp.bfloat16))

    grid = (Mp // tm, Np // tn, Kp // tk)

    out_p = pl.pallas_call(
        _linear_sigmoid_kernel,
        out_shape=jax.ShapeDtypeStruct((Mp, Np), out_dtype),
        grid_spec=pltpu.PrefetchScalarGridSpec(
            num_scalar_prefetch=0,
            grid=grid,
            in_specs=[
                pl.BlockSpec((tm, tk), lambda i, j, k: (i, k)),   # x tile
                pl.BlockSpec((tk, tn), lambda i, j, k: (k, j)),   # W^T tile
                pl.BlockSpec((1, tn), lambda i, j, k: (0, j)),    # bias (per-N)
            ],
            out_specs=pl.BlockSpec((tm, tn), lambda i, j, k: (i, j)),
            scratch_shapes=[pltpu.VMEM((tm, tn), jnp.float32)],
        ),
        compiler_params=pltpu.CompilerParams(
            dimension_semantics=("parallel", "parallel", "arbitrary"),
            # No vmem_limit_bytes override: max tile footprint (~12 MiB)
            # fits the default scoped VMEM limit on v5e/v6e/v7x.
        ),
    )(x_p, w_p, b_p)

    return out_p[:B, :d_out]


def _reference(x, w_torch, b):
    """Plain-JAX reference of the PyTorch semantics: sigmoid(x @ W^T + b)."""
    return jax.nn.sigmoid(x @ w_torch.T + b[None, :])


def _make_params(key, input_size, output_size):
    """Deterministic nn.Linear-style init: uniform(+/- 1/sqrt(fan_in))."""
    kw, kb = jax.random.split(key)
    bound = 1.0 / (input_size ** 0.5)
    w_torch = jax.random.uniform(
        kw, (output_size, input_size), minval=-bound, maxval=bound,
        dtype=jnp.float32)
    b = jax.random.uniform(
        kb, (output_size,), minval=-bound, maxval=bound, dtype=jnp.float32)
    return w_torch, b


if __name__ == "__main__":
    key = jax.random.PRNGKey(0)
    k1, k2, k3, k4 = jax.random.split(key, 4)

    # --- Test 1: small shape implied by the module (single-tile grid). ---
    batch, input_size, output_size = 8, 32, 16
    x = jax.random.normal(k1, (batch, input_size), dtype=jnp.float32)
    w_torch, b = _make_params(k2, input_size, output_size)

    w_p, b_p, d_in, d_out = prepare_params(w_torch, b)        # one-time prep
    out = linear_sigmoid(x, w_p, b_p, d_in, d_out)
    jax.block_until_ready(out)
    ref = _reference(x, w_torch, b)
    assert out.shape == (batch, output_size)
    assert jnp.allclose(out, ref, atol=2e-2, rtol=2e-2), (
        float(jnp.max(jnp.abs(out - ref))))

    # --- Test 2: multi-tile grid (divisible tiles, single M block). ---
    batch2, input_size2, output_size2 = 384, 640, 384
    x2 = jax.random.normal(k3, (batch2, input_size2), dtype=jnp.float32)
    w_torch2, b2 = _make_params(k4, input_size2, output_size2)

    w_p2, b_p2, d_in2, d_out2 = prepare_params(w_torch2, b2)  # one-time prep
    out2 = linear_sigmoid(x2, w_p2, b_p2, d_in2, d_out2)
    jax.block_until_ready(out2)
    ref2 = _reference(x2, w_torch2, b2)
    assert out2.shape == (batch2, output_size2)
    assert jnp.allclose(out2, ref2, atol=3e-2, rtol=3e-2), (
        float(jnp.max(jnp.abs(out2 - ref2))))

    print("KERNEL_OK")
</pallas_src>

<mosaic_0001>
module attributes {stable_mosaic.version = 11 : i64} {
  func.func @_linear_sigmoid_kernel(%arg0: i32, %arg1: i32, %arg2: i32, %arg3: memref<16x128xbf16, #tpu.memory_space<vmem>>, %arg4: memref<128x128xbf16, #tpu.memory_space<vmem>>, %arg5: memref<1x128xf32, #tpu.memory_space<vmem>>, %arg6: memref<16x128xf32, #tpu.memory_space<vmem>>, %arg7: memref<16x128xf32, #tpu.memory_space<vmem>>) attributes {dimension_semantics = [#tpu.dimension_semantics<parallel>, #tpu.dimension_semantics<parallel>, #tpu.dimension_semantics<arbitrary>], iteration_bounds = array<i64: 1, 1, 1>, scalar_prefetch = 0 : i64, scratch_operands = 1 : i64, tpu.core_type = #tpu.core_type<tc>, window_params = [{transform_indices = @transform_0, window_bounds = array<i64: 16, 128>}, {transform_indices = @transform_1, window_bounds = array<i64: 128, 128>}, {transform_indices = @transform_2, window_bounds = array<i64: 1, 128>}, {transform_indices = @transform_3, window_bounds = array<i64: 16, 128>}]} {
    %c0_i32 = arith.constant 0 : i32
    %0 = arith.cmpi eq, %arg2, %c0_i32 : i32
    %1 = arith.extui %0 : i1 to i32
    %c0_i32_0 = arith.constant 0 : i32
    %2 = arith.cmpi ne, %1, %c0_i32_0 : i32
    scf.if %2 {
      %c0_10 = arith.constant 0 : index
      %c0_11 = arith.constant 0 : index
      %12 = vector.load %arg5[%c0_10, %c0_11] : memref<1x128xf32, #tpu.memory_space<vmem>>, vector<1x128xf32>
      %13 = vector.shape_cast %12 : vector<1x128xf32> to vector<1x128xf32>
      %14 = vector.broadcast %13 : vector<1x128xf32> to vector<16x128xf32>
      %c0_12 = arith.constant 0 : index
      %c0_13 = arith.constant 0 : index
      %15 = vector.load %arg7[%c0_12, %c0_13] : memref<16x128xf32, #tpu.memory_space<vmem>>, vector<16x128xf32>
      tpu.vector_store %arg7[%c0_12, %c0_13], %14 {strides = array<i32>} : memref<16x128xf32, #tpu.memory_space<vmem>>, vector<16x128xf32>,
    } else {
    }
    %c0 = arith.constant 0 : index
    %c0_1 = arith.constant 0 : index
    %3 = vector.load %arg7[%c0, %c0_1] : memref<16x128xf32, #tpu.memory_space<vmem>>, vector<16x128xf32>
    %c0_2 = arith.constant 0 : index
    %c0_3 = arith.constant 0 : index
    %4 = vector.load %arg3[%c0_2, %c0_3] : memref<16x128xbf16, #tpu.memory_space<vmem>>, vector<16x128xbf16>
    %c0_4 = arith.constant 0 : index
    %c0_5 = arith.constant 0 : index
    %5 = vector.load %arg4[%c0_4, %c0_5] : memref<128x128xbf16, #tpu.memory_space<vmem>>, vector<128x128xbf16>
    %cst = arith.constant dense<0.000000e+00> : vector<16x128xf32>
    %6 = tpu.matmul %4, %5, %cst {dimension_numbers = #tpu.dot_dimension_numbers<[1], [0], [0], [1], [0, 0, 1, 1], [], []>} : vector<16x128xbf16>, vector<128x128xbf16>, vector<16x128xf32> -> vector<16x128xf32>
    %7 = arith.addf %3, %6 : vector<16x128xf32>
    %c0_6 = arith.constant 0 : index
    %c0_7 = arith.constant 0 : index
    %8 = vector.load %arg7[%c0_6, %c0_7] : memref<16x128xf32, #tpu.memory_space<vmem>>, vector<16x128xf32>
    tpu.vector_store %arg7[%c0_6, %c0_7], %7 {strides = array<i32>} : memref<16x128xf32, #tpu.memory_space<vmem>>, vector<16x128xf32>,
    %c0_i32_8 = arith.constant 0 : i32
    %9 = arith.cmpi eq, %arg2, %c0_i32_8 : i32
    %10 = arith.extui %9 : i1 to i32
    %c0_i32_9 = arith.constant 0 : i32
    %11 = arith.cmpi ne, %10, %c0_i32_9 : i32
    scf.if %11 {
      %c0_10 = arith.constant 0 : index
      %c0_11 = arith.constant 0 : index
      %12 = vector.load %arg7[%c0_10, %c0_11] : memref<16x128xf32, #tpu.memory_space<vmem>>, vector<16x128xf32>
      %13 = arith.negf %12 : vector<16x128xf32>
      %14 = math.exp %13 : vector<16x128xf32>
      %cst_12 = arith.constant 1.000000e+00 : f32
      %15 = vector.broadcast %cst_12 : f32 to vector<16x128xf32>
      %16 = arith.addf %15, %14 : vector<16x128xf32>
      %17 = arith.divf %15, %16 : vector<16x128xf32>
      %c0_13 = arith.constant 0 : index
      %c0_14 = arith.constant 0 : index
      %18 = vector.load %arg6[%c0_13, %c0_14] : memref<16x128xf32, #tpu.memory_space<vmem>>, vector<16x128xf32>
      tpu.vector_store %arg6[%c0_13, %c0_14], %17 {strides = array<i32>} : memref<16x128xf32, #tpu.memory_space<vmem>>, vector<16x128xf32>,
    } else {
    }
    return
  }
  func.func @transform_0(%arg0: i32, %arg1: i32, %arg2: i32) -> (i32, i32) {
    %c0_i32 = arith.constant 0 : i32
    return %arg0, %arg2 : i32, i32
  }
  func.func @transform_1(%arg0: i32, %arg1: i32, %arg2: i32) -> (i32, i32) {
    %c0_i32 = arith.constant 0 : i32
    return %arg2, %arg1 : i32, i32
  }
  func.func @transform_2(%arg0: i32, %arg1: i32, %arg2: i32) -> (i32, i32) {
    %c0_i32 = arith.constant 0 : i32
    %c0_i32_0 = arith.constant 0 : i32
    return %c0_i32, %arg1 : i32, i32
  }
  func.func @transform_3(%arg0: i32, %arg1: i32, %arg2: i32) -> (i32, i32) {
    %c0_i32 = arith.constant 0 : i32
    return %arg0, %arg1 : i32, i32
  }
}

</mosaic_0001>

<bundles_post_ra>
// kernel: tpu_custom_call.1
= control target key start
LH: loop header
LB: loop body
LE: loop exit
PB: predicated region body
PF: predicated region fallthrough
CT: control target
= control target key end

     0   :  { %8 = vsyncpa [#allocation4], 0  ;;  %s394_s0 = inlined_call_operand.hbm [shape: bf16[16,128], index: 0, kind: input, shape index: {}]   ;;  %s395_s1 = inlined_call_operand.hbm [shape: bf16[128,128], index: 1, kind: input, shape index: {}]   ;;  %s396_s2 = inlined_call_operand.vmem [shape: f32[1,128], index: 2, kind: input, shape index: {}]   ;;  %s397_s3 = inlined_call_operand.hbm [shape: f32[16,128], index: 3, kind: output, shape index: {}]  }
   0x1   :  { %9 = vsyncpa [#allocation7], 0 }
   0x2   :  { %10 = vsyncpa [#allocation5], 0  ;;  %s15_s14 = sshll.u32 %s394_s0, 4  ;;  %s355_s15 = smov [#allocation3]   ;;  %s16_s14 = int_to_ptr.hbm [resolvable:$true] %s15_s14 }
   0x3   :  { %s17_s16 = sshll.u32 %s355_s15, 4  ;;  %s28_s19 = sshll.u32 %s395_s1, 4  ;;  %s18_s16 = int_to_ptr.vmem [resolvable:$true] %s17_s16  ;;  %s29_s19 = int_to_ptr.hbm [resolvable:$true] %s28_s19 }
   0x4   :  { %s356_s20 = smov 64   ;;  %s357_s21 = smov 4  }
   0x5   :  { %23 = dma.hbm_to_vmem [thread:$0]  %s16_s14, 128, %s18_s16, [#allocation4], %s356_s20, %s356_s20, %s357_s21  }
   0x6   :  { %s358_s22 = smov [#allocation6]  }
   0x7   :  { %s30_s23 = sshll.u32 %s358_s22, 4  ;;  %s31_s23 = int_to_ptr.vmem [resolvable:$true] %s30_s23 }
   0x8   :  { %36 = dma.hbm_to_vmem [thread:$0]  %s29_s19, 1024, %s31_s23, [#allocation7], %s356_s20, %s356_s20, %s357_s21  }
   0x9   :  { %349 = dma.done.wait [#allocation4], 128  }
   0xa   :  { %350 = vsyncadd [#allocation4], 4294967168 }
   0xb   :  { %351 = dma.done.wait [#allocation7], 1024  }
   0xc   :  { %352 = vsyncadd [#allocation7], 4294966272  ;;  %v260_v0 = vld [vmem:[#allocation6 + $0x38] sm:$0xff]  ;;  %v259_v1 = vld [vmem:[#allocation6 + $0x30] sm:$0xff]  ;;  %s200_s27 = sshll.u32 %s397_s3, 4  ;;  %s360_s28 = smov 128   ;;  %s201_s27 = int_to_ptr.hbm [resolvable:$true] %s200_s27 }
   0xd   :  { %131 = vmatpush.bf16.msra.mxu0 %v260_v0  ;;  %v258_v2 = vld [vmem:[#allocation6 + $0x28] sm:$0xff]  ;;  %v257_v3 = vld [vmem:[#allocation6 + $0x20] sm:$0xff]  ;;  %v256_v4 = vld [vmem:[#allocation6 + $0x18] sm:$0xff]  ;;  %s361_s29 = smov 8  }
   0xe   :  { %v255_v5 = vld [vmem:[#allocation6 + $0x10] sm:$0xff]  ;;  %v254_v6 = vld [vmem:[#allocation6 + $0x8] sm:$0xff]  ;;  %v253_v7 = vld [vmem:[#allocation6] sm:$0xff] }
   0xf   :  { %v252_v8 = vld [vmem:[#allocation3] sm:$0xff] }
  0x10   :  { %v268_v9 = vld [vmem:[%s396_s2] ss:$0 sm:$0xff]  ;;  %s359_s2 = smov [#allocation8]  }
  0x11   :  { %132 = vmatpush.bf16.msra.mxu0 %v259_v1  ;;  %s198_s24 = sshll.u32 %s359_s2, 4  ;;  %s199_s24 = int_to_ptr.vmem [resolvable:$true] %s198_s24 }
  0x15   :  { %133 = vmatpush.bf16.msra.mxu0 %v258_v2 }
  0x19   :  { %134 = vmatpush.bf16.msra.mxu0 %v257_v3 }
  0x1d   :  { %135 = vmatpush.bf16.msra.mxu0 %v256_v4 }
  0x21   :  { %136 = vmatpush.bf16.msra.mxu0 %v255_v5 }
  0x25   :  { %137 = vmatpush.bf16.msra.mxu0 %v254_v6 }
  0x29   :  { %138 = vmatpush.bf16.msra.mxu0 %v253_v7 }
  0x2c   :  { %139 = vmatmul.bf16.vlgmr.msra.gmra.mxu0 %v252_v8 }
  0xa9   :  { %v140_v10 = vpop.f32.mrf.mxu0 }
  0xaa   :  { %v145_v11 = vadd.f32 %v268_v9, %v140_v10 }
  0xac   :  { %v250_v12 = vmul.f32 -1.442695, %v145_v11 }
  0xae   :  { %269 = vpow2.f32 %v250_v12 }
  0xb1   :  { %v142_v13 = vpop.f32.mrf.mxu0 }
  0xb2   :  { %v146_v14 = vadd.f32 %v268_v9, %v142_v13 }
  0xb4   :  { %v270_v15 = vpop.eup %269  ;;  %v251_v16 = vmul.f32 -1.442695, %v146_v14 }
  0xb5   :  { %v160_v17 = vadd.f32 1.0, %v270_v15 }
  0xb6   :  { %271 = vpow2.f32 %v251_v16 }
  0xb7   :  { %273 = vrcp.f32 %v160_v17  ;;  %v173_v23 = vand.u32 2147483648, %v160_v17  ;;  %v171_v25 = vand.u32 2147483647, %v160_v17  ;;  %vm167_vm1 = vweird.f32 %v160_v17 }
  0xb9   :  { %v174_v28 = vor.u32 1.1754944e-38, %v173_v23  ;;  %vm172_vm3 = vcmp.eq.f32.partialorder %v171_v25, 8.507059e+37 }
  0xbc   :  { %v272_v18 = vpop.eup %271 }
  0xbd   :  { %v274_v19 = vpop.eup %273  ;;  %v161_v20 = vadd.f32 1.0, %v272_v18 }
  0xbe   :  { %v163_v21 = vmul.f32 %v274_v19, %v160_v17  ;;  %vm168_vm0 = vweird.f32 %v274_v19 }
  0xbf   :  { %275 = vrcp.f32 %v161_v20  ;;  %vm169_vm2 = vmor %vm167_vm1, %vm168_vm0  ;;  %v188_v33 = vand.u32 2147483648, %v161_v20  ;;  %v186_v35 = vand.u32 2147483647, %v161_v20  ;;  %vm182_vm5 = vweird.f32 %v161_v20 }
  0xc0   :  { %v164_v22 = vsub.f32 1.0, %v163_v21 }
  0xc1   :  { %v189_v37 = vor.u32 1.1754944e-38, %v188_v33  ;;  %vm187_vm7 = vcmp.eq.f32.partialorder %v186_v35, 8.507059e+37 }
  0xc2   :  { %v165_v24 = vmul.f32 %v274_v19, %v164_v22 }
  0xc4   :  { %v166_v26 = vadd.f32 %v274_v19, %v165_v24 }
  0xc5   :  { %v276_v27 = vpop.eup %275 }
  0xc6   :  { %v178_v29 = vmul.f32 %v276_v27, %v161_v20  ;;  %v170_v30 = vsel %vm169_vm2, %v274_v19, %v166_v26  ;;  %vm183_vm4 = vweird.f32 %v276_v27 }
  0xc7   :  { %v175_v31 = vsel %vm172_vm3, %v174_v28, %v170_v30  ;;  %vm184_vm6 = vmor %vm182_vm5, %vm183_vm4 }
  0xc8   :  { %v179_v32 = vsub.f32 1.0, %v178_v29  ;;  %192 = vst [vmem:[#allocation8] sm:$0xff] %v175_v31 }
  0xca   :  { %v180_v34 = vmul.f32 %v276_v27, %v179_v32 }
  0xcc   :  { %v181_v36 = vadd.f32 %v276_v27, %v180_v34 }
  0xce   :  { %v185_v38 = vsel %vm184_vm6, %v276_v27, %v181_v36 }
  0xcf   :  { %v190_v39 = vsel %vm187_vm7, %v189_v37, %v185_v38 }
  0xd0   :  { %193 = vst [vmem:[#allocation8 + $0x8] sm:$0xff] %v190_v39 }
  0xd1   :  { %206 = dma.vmem_to_hbm [thread:$0]  %s199_s24, 256, %s201_s27, [#allocation5], %s360_s28, %s360_s28, %s361_s29  }
  0xd2   :  { %353 = dma.done.wait [#allocation5], 256  }
  0xd3   :  { %354 = vsyncadd [#allocation5], 4294967040 }
  0xd4   :  { %211 = vsyncpa [#allocation4], 1 }
  0xd5   :  { %212 = vsyncpa [#allocation7], 1 }
  0xd6   :  { %213 = vsyncpa [#allocation5], 1 }

</bundles_post_ra>
